<compile_context>
chip_gen: v7x
topology: tpu7x:2x2x1
jax: 0.10.0
libtpu: 0.0.40
codegen_flags: <defaults>
</compile_context>

<pallas_src>
import functools

import jax
import jax.numpy as jnp
from jax import lax
from jax.experimental import pallas as pl
from jax.experimental.pallas import tpu as pltpu

_ROW = 128          # lane stride of one padded image row (keeps tap dh offsets vreg-aligned)
_MARGIN_ROWS = 4    # rows added per image: 1 top zero pad + (3 bottom zero rows = pad + tap margin)


def _rescat_kernel(x_ref, w_ref, thr_ref, o_ref, *, nb, cin, ltot):
    """One grid step: 3x3 conv + IF spike + identity passthrough for `nb` images.

    x_ref:   (1, nb*Cin, S)       raw zero-padded images, S = Hs*128 (row stride 128)
    w_ref:   (Cout, 9*Cin)        BN-folded weights, K index = (dh*3 + dw)*Cin + c
    thr_ref: (Cout, 1)            spike threshold with the folded bias absorbed (1 - b_fold)
    o_ref:   (1, Cout+Cin, ltot)  rows [0,Cout) spikes, rows [Cout,Cout+Cin) identity copy
    """
    xall = x_ref[0]                                        # (nb*Cin, S)
    if nb == 1:
        xf = xall                                          # (Cin, S)
    else:
        # stack the nb images' slabs along lanes (every piece is a multiple of 128 lanes)
        xf = jnp.concatenate(
            [xall[n * cin:(n + 1) * cin, :] for n in range(nb)], axis=1)

    # im2col with aligned taps: hoist the 3 distinct dw lane-shifts once, then take 3
    # vreg-aligned dh slices of each shifted slab (tap flat offset = dh*128 + dw).
    span = 2 * _ROW + ltot
    shifted = [xf[:, dw:dw + span] for dw in range(3)]
    taps = [shifted[dw][:, dh * _ROW: dh * _ROW + ltot]    # (Cin, ltot) each
            for dh in range(3) for dw in range(3)]

    rhs = jnp.concatenate(taps, axis=0)                    # (9*Cin, ltot)
    conv = jnp.dot(w_ref[...], rhs, preferred_element_type=jnp.float32)
    spikes = (conv >= thr_ref[...]).astype(o_ref.dtype)    # IF neuron, bias folded in thr

    # identity channels are exactly the (dh=1, dw=1) tap of the raw padded input
    ident = taps[1 * 3 + 1].astype(o_ref.dtype)
    o_ref[0] = jnp.concatenate([spikes, ident], axis=0)    # (Cout+Cin, ltot) dense store


def _auto_images_per_block(N, Cin, Cout, H, vmem_budget_bytes=8 << 20):
    """Largest images-per-block under a VMEM budget, keeping >= 2 grid steps (v7x: 2 TCs)."""
    hs = H + _MARGIN_ROWS
    best = 1
    for nb in range(1, N + 1):
        if N % nb:
            continue
        if N >= 2 and N // nb < 2:
            break
        in_bytes = nb * Cin * hs * _ROW * 4
        out_bytes = (Cout + Cin) * (nb * hs - _MARGIN_ROWS) * _ROW * 4
        if 2 * (in_bytes + out_bytes) > vmem_budget_bytes:   # double-buffered blocks
            break
        best = nb
    return best


def rescat_block(x_nchw, weight_hwio, bias, bn_gamma, bn_beta, bn_mean, bn_var,
                 eps=1e-5, images_per_block=None):
    """Forward of ResCatBlock. x_nchw: (N, Cin, H, W) f32 -> (N, Cout+Cin, H, W)."""
    N, Cin, H, W = x_nchw.shape
    Cout = weight_hwio.shape[-1]
    assert W + 2 <= _ROW, "kernel assumes one padded image row fits in 128 lanes"

    nb = images_per_block or _auto_images_per_block(N, Cin, Cout, H)
    assert N % nb == 0, "batch must be divisible by images_per_block"
    G = N // nb
    Hs = H + _MARGIN_ROWS                 # per-image slab rows: 1 top pad + H data + 3 zero
    S = Hs * _ROW                         # per-image flattened slab length (multiple of 128)
    Ltot = (nb * Hs - _MARGIN_ROWS) * _ROW   # output columns per grid step (multiple of 128)

    # --- BN folding (norm applied AFTER constant padding) ---------------------------------
    # conv(norm(pad(x))) == conv_zeropad(x, W*scale) + bias + sum_hwc(W)*shift
    scale = bn_gamma / jnp.sqrt(bn_var + eps)
    shift = bn_beta - bn_mean * scale
    w_fold = weight_hwio * scale[None, None, :, None]                 # (3,3,Cin,Cout)
    b_fold = bias + jnp.einsum("hwio,i->o", weight_hwio, shift)       # (Cout,)
    w_km = jnp.transpose(w_fold, (3, 0, 1, 2)).reshape(Cout, 9 * Cin).astype(jnp.float32)
    thr = (1.0 - b_fold).reshape(Cout, 1).astype(jnp.float32)         # bias -> threshold

    # --- layout glue: ONE pad builds the whole kernel layout, then a free reshape ---------
    # rows: 1 zero on top, 3 zeros below (bottom pad + tap-overrun margin)
    # lanes: 1 zero on the left, zero-filled up to 128
    x_slab = jnp.pad(x_nchw, ((0, 0), (0, 0), (1, _MARGIN_ROWS - 1), (1, _ROW - 1 - W)))
    x_in = x_slab.reshape(G, nb * Cin, S)                             # contiguous reshape

    out = pl.pallas_call(
        functools.partial(_rescat_kernel, nb=nb, cin=Cin, ltot=Ltot),
        out_shape=jax.ShapeDtypeStruct((G, Cout + Cin, Ltot), jnp.float32),
        grid_spec=pltpu.PrefetchScalarGridSpec(
            num_scalar_prefetch=0,
            grid=(G,),
            in_specs=[
                pl.BlockSpec((1, nb * Cin, S), lambda b: (b, 0, 0)),
                pl.BlockSpec((Cout, 9 * Cin), lambda b: (0, 0)),
                pl.BlockSpec((Cout, 1), lambda b: (0, 0)),
            ],
            out_specs=pl.BlockSpec((1, Cout + Cin, Ltot), lambda b: (b, 0, 0)),
        ),
        compiler_params=pltpu.CompilerParams(
            dimension_semantics=("parallel",),
            vmem_limit_bytes=32 * 1024 * 1024),
    )(x_in, w_km, thr)

    # --- strip junk rows / lanes (identity already concatenated inside the kernel) --------
    rows = nb * Hs - _MARGIN_ROWS
    out = out.reshape(G, Cout + Cin, rows, _ROW)
    if nb == 1:
        return out[:, :, :H, :W]                                      # (N, Cout+Cin, H, W)
    out = jnp.pad(out, ((0, 0), (0, 0), (0, _MARGIN_ROWS), (0, 0)))
    out = out.reshape(G, Cout + Cin, nb, Hs, _ROW)[:, :, :, :H, :W]
    return jnp.transpose(out, (0, 2, 1, 3, 4)).reshape(N, Cout + Cin, H, W)


def _reference(x_nchw, weight_hwio, bias, bn_gamma, bn_beta, bn_mean, bn_var, eps=1e-5):
    """Pure-JAX reference mirroring the PyTorch forward (pad -> norm -> conv -> IF -> cat)."""
    x_nhwc = jnp.transpose(x_nchw, (0, 2, 3, 1))
    x_pad = jnp.pad(x_nhwc, ((0, 0), (1, 1), (1, 1), (0, 0)))
    scale = bn_gamma / jnp.sqrt(bn_var + eps)
    shift = bn_beta - bn_mean * scale
    xn = x_pad * scale[None, None, None, :] + shift[None, None, None, :]
    conv = lax.conv_general_dilated(
        xn, weight_hwio, window_strides=(1, 1), padding="VALID",
        dimension_numbers=("NHWC", "HWIO", "NHWC")) + bias[None, None, None, :]
    spike = (conv >= 1.0).astype(jnp.float32)
    out = jnp.concatenate([spike, x_nhwc], axis=-1)
    return jnp.transpose(out, (0, 3, 1, 2)), jnp.transpose(conv, (0, 3, 1, 2))


if __name__ == "__main__":
    # Small shapes consistent with the module: N=2, inplanes=4, planes=4, 16x16.
    N, Cin, Cout, H, W = 2, 4, 4, 16, 16

    key = jax.random.PRNGKey(0)
    k_x, k_w, k_b, k_g, k_be, k_m, k_v = jax.random.split(key, 7)

    x = jax.random.normal(k_x, (N, Cin, H, W), jnp.float32)
    weight = jax.random.normal(k_w, (3, 3, Cin, Cout), jnp.float32) * 0.3   # HWIO
    bias = jax.random.normal(k_b, (Cout,), jnp.float32) * 0.1
    bn_gamma = 1.0 + 0.1 * jax.random.normal(k_g, (Cin,), jnp.float32)
    bn_beta = 0.1 * jax.random.normal(k_be, (Cin,), jnp.float32)
    bn_mean = 0.1 * jax.random.normal(k_m, (Cin,), jnp.float32)
    bn_var = jnp.abs(1.0 + 0.1 * jax.random.normal(k_v, (Cin,), jnp.float32))

    out = rescat_block(x, weight, bias, bn_gamma, bn_beta, bn_mean, bn_var)
    out = jax.block_until_ready(out)

    ref_out, ref_conv = _reference(x, weight, bias, bn_gamma, bn_beta, bn_mean, bn_var)
    assert out.shape == (N, Cout + Cin, H, W), out.shape
    # identity channels are copied bit-exactly through the kernel
    assert bool(jnp.array_equal(out[:, Cout:], x)), "identity channels mismatch"
    # spike channels: the hard threshold makes bitwise agreement brittle for conv values
    # within float eps of 1.0 (different summation order vs lax.conv), so only require
    # agreement away from the threshold.
    spike_ok = (out[:, :Cout] == ref_out[:, :Cout]) | (jnp.abs(ref_conv - 1.0) < 1e-3)
    assert bool(jnp.all(spike_ok)), "spike mismatch away from threshold"

    print("KERNEL_OK")
</pallas_src>

<mosaic_0001>
module attributes {stable_mosaic.version = 11 : i64} {
  func.func @_rescat_kernel(%arg0: i32, %arg1: memref<1x4x2560xf32, #tpu.memory_space<vmem>>, %arg2: memref<4x36xf32, #tpu.memory_space<vmem>>, %arg3: memref<4x1xf32, #tpu.memory_space<vmem>>, %arg4: memref<1x8x2048xf32, #tpu.memory_space<vmem>>) attributes {dimension_semantics = [#tpu.dimension_semantics<parallel>], iteration_bounds = array<i64: 2>, scalar_prefetch = 0 : i64, scratch_operands = 0 : i64, tpu.core_type = #tpu.core_type<tc>, window_params = [{transform_indices = @transform_0, window_bounds = array<i64: 1, 4, 2560>}, {pipeline_mode = #tpu.pipeline_mode<synchronous>, transform_indices = @transform_1, window_bounds = array<i64: 4, 36>}, {pipeline_mode = #tpu.pipeline_mode<synchronous>, transform_indices = @transform_2, window_bounds = array<i64: 4, 1>}, {transform_indices = @transform_3, window_bounds = array<i64: 1, 8, 2048>}]} {
    %c0 = arith.constant 0 : index
    %c0_0 = arith.constant 0 : index
    %c0_1 = arith.constant 0 : index
    %0 = vector.load %arg1[%c0, %c0_0, %c0_1] : memref<1x4x2560xf32, #tpu.memory_space<vmem>>, vector<1x4x2560xf32>
    %1 = vector.shape_cast %0 : vector<1x4x2560xf32> to vector<4x2560xf32>
    %2 = vector.extract_strided_slice %1 {offsets = [0, 0], sizes = [4, 2304], strides = [1, 1]} : vector<4x2560xf32> to vector<4x2304xf32>
    %3 = vector.extract_strided_slice %1 {offsets = [0, 1], sizes = [4, 2304], strides = [1, 1]} : vector<4x2560xf32> to vector<4x2304xf32>
    %4 = vector.extract_strided_slice %1 {offsets = [0, 2], sizes = [4, 2304], strides = [1, 1]} : vector<4x2560xf32> to vector<4x2304xf32>
    %5 = vector.extract_strided_slice %2 {offsets = [0, 0], sizes = [4, 2048], strides = [1, 1]} : vector<4x2304xf32> to vector<4x2048xf32>
    %6 = vector.extract_strided_slice %3 {offsets = [0, 0], sizes = [4, 2048], strides = [1, 1]} : vector<4x2304xf32> to vector<4x2048xf32>
    %7 = vector.extract_strided_slice %4 {offsets = [0, 0], sizes = [4, 2048], strides = [1, 1]} : vector<4x2304xf32> to vector<4x2048xf32>
    %8 = vector.extract_strided_slice %2 {offsets = [0, 128], sizes = [4, 2048], strides = [1, 1]} : vector<4x2304xf32> to vector<4x2048xf32>
    %9 = vector.extract_strided_slice %3 {offsets = [0, 128], sizes = [4, 2048], strides = [1, 1]} : vector<4x2304xf32> to vector<4x2048xf32>
    %10 = vector.extract_strided_slice %4 {offsets = [0, 128], sizes = [4, 2048], strides = [1, 1]} : vector<4x2304xf32> to vector<4x2048xf32>
    %11 = vector.extract_strided_slice %2 {offsets = [0, 256], sizes = [4, 2048], strides = [1, 1]} : vector<4x2304xf32> to vector<4x2048xf32>
    %12 = vector.extract_strided_slice %3 {offsets = [0, 256], sizes = [4, 2048], strides = [1, 1]} : vector<4x2304xf32> to vector<4x2048xf32>
    %13 = vector.extract_strided_slice %4 {offsets = [0, 256], sizes = [4, 2048], strides = [1, 1]} : vector<4x2304xf32> to vector<4x2048xf32>
    %14 = tpu.concatenate %5, %6, %7, %8, %9, %10, %11, %12, %13 in 0 : vector<4x2048xf32>, vector<4x2048xf32>, vector<4x2048xf32>, vector<4x2048xf32>, vector<4x2048xf32>, vector<4x2048xf32>, vector<4x2048xf32>, vector<4x2048xf32>, vector<4x2048xf32> -> vector<36x2048xf32>
    %c0_2 = arith.constant 0 : index
    %c0_3 = arith.constant 0 : index
    %15 = vector.load %arg2[%c0_2, %c0_3] : memref<4x36xf32, #tpu.memory_space<vmem>>, vector<4x36xf32>
    %cst = arith.constant dense<0.000000e+00> : vector<4x2048xf32>
    %16 = tpu.matmul %15, %14, %cst {dimension_numbers = #tpu.dot_dimension_numbers<[1], [0], [0], [1], [0, 0, 1, 1], [], []>} : vector<4x36xf32>, vector<36x2048xf32>, vector<4x2048xf32> -> vector<4x2048xf32>
    %c0_4 = arith.constant 0 : index
    %c0_5 = arith.constant 0 : index
    %17 = vector.load %arg3[%c0_4, %c0_5] : memref<4x1xf32, #tpu.memory_space<vmem>>, vector<4x1xf32>
    %18 = vector.broadcast %17 : vector<4x1xf32> to vector<4x2048xf32>
    %19 = arith.cmpf oge, %16, %18 : vector<4x2048xf32>
    %20 = arith.extui %19 : vector<4x2048xi1> to vector<4x2048xi32>
    %21 = arith.sitofp %20 : vector<4x2048xi32> to vector<4x2048xf32>
    %22 = tpu.concatenate %21, %9 in 0 : vector<4x2048xf32>, vector<4x2048xf32> -> vector<8x2048xf32>
    %c0_6 = arith.constant 0 : index
    %c0_7 = arith.constant 0 : index
    %c0_8 = arith.constant 0 : index
    %23 = vector.load %arg4[%c0_6, %c0_7, %c0_8] : memref<1x8x2048xf32, #tpu.memory_space<vmem>>, vector<1x8x2048xf32>
    %24 = vector.shape_cast %23 : vector<1x8x2048xf32> to vector<8x2048xf32>
    %25 = vector.shape_cast %22 : vector<8x2048xf32> to vector<1x8x2048xf32>
    tpu.vector_store %arg4[%c0_6, %c0_7, %c0_8], %25 {strides = array<i32>} : memref<1x8x2048xf32, #tpu.memory_space<vmem>>, vector<1x8x2048xf32>,
    return
  }
  func.func @transform_0(%arg0: i32) -> (i32, i32, i32) {
    %c0_i32 = arith.constant 0 : i32
    %c0_i32_0 = arith.constant 0 : i32
    %c0_i32_1 = arith.constant 0 : i32
    return %arg0, %c0_i32, %c0_i32_0 : i32, i32, i32
  }
  func.func @transform_1(%arg0: i32) -> (i32, i32) {
    %c0_i32 = arith.constant 0 : i32
    %c0_i32_0 = arith.constant 0 : i32
    %c0_i32_1 = arith.constant 0 : i32
    return %c0_i32, %c0_i32_0 : i32, i32
  }
  func.func @transform_2(%arg0: i32) -> (i32, i32) {
    %c0_i32 = arith.constant 0 : i32
    %c0_i32_0 = arith.constant 0 : i32
    %c0_i32_1 = arith.constant 0 : i32
    return %c0_i32, %c0_i32_0 : i32, i32
  }
  func.func @transform_3(%arg0: i32) -> (i32, i32, i32) {
    %c0_i32 = arith.constant 0 : i32
    %c0_i32_0 = arith.constant 0 : i32
    %c0_i32_1 = arith.constant 0 : i32
    return %arg0, %c0_i32, %c0_i32_0 : i32, i32, i32
  }
}

</mosaic_0001>

<bundles_post_ra>
// kernel: tpu_custom_call.1
= control target key start
LH: loop header
LB: loop body
LE: loop exit
PB: predicated region body
PF: predicated region fallthrough
CT: control target
= control target key end

     0   :  { %8 = vsyncpa [#allocation3], 0  ;;  %s2438_s0 = inlined_call_operand.hbm [shape: f32[2,4,2560], index: 0, kind: input, shape index: {}]   ;;  %s2439_s1 = inlined_call_operand.vmem [shape: f32[4,36], index: 1, kind: input, shape index: {}]   ;;  %s2440_s2 = inlined_call_operand.vmem [shape: f32[4,1], index: 2, kind: input, shape index: {}]   ;;  %s2441_s3 = inlined_call_operand.hbm [shape: f32[2,8,2048], index: 3, kind: output, shape index: {}]  }
   0x1   :  { %10 = vsyncpa [#allocation3 + $0x1], 0 }
   0x2   :  { %11 = vsyncpa [#allocation4], 0 }
   0x3   :  { %13 = vsyncpa [#allocation4 + $0x1], 0  ;;  %s1680_s12 = smov 0   ;;  %s1682_s13 = smov 0  }
   0x4   :  { %s1684_s14 = smov 0   ;;  %s1686_s15 = smov 0  }
   0x5 LB: > { %s1701_s16 = sadd.s32 4294967295, %s1652_s15   ;;  %s1316_s17 = sadd.s32 4294967294, %s1652_s15   ;;  %s1652_s15 = sphi %s1686_s15, %s2455_s15   ;;  %s1648_s14 = sphi %s1684_s14, %s2454_s14   ;;  %s1644_s13 = sphi %s1682_s13, %s2453_s13   ;;  %s1640_s12 = sphi %s1680_s12, %s2452_s12  }
   0x6   : > { %s1705_s18 = sadd.s32 1, %s1652_s15   ;;  %s26_s19 = sadd.s32 1, %s1648_s14 }
   0x7   : > { %s23_s20 = ssub.s32 %s1652_s15, %s1705_s18  ;;  %p33_p0 = scmp.ne.s32.totalorder %s1648_s14, %s1644_s13 }
   0x8   : > { %p24_p1 = scmp.eq.s32.totalorder %s23_s20, 0  ;;  %p34_p2 = scmp.eq.s32.totalorder %s1652_s15, 0 }
   0x9   : > { %p39_p3 = scmp.ne.s32.totalorder %s1644_s13, %s1640_s12  ;;  %p40_p4 = scmp.eq.s32.totalorder %s1701_s16, 0 }
   0xa   : > { %s1717_s21 = scalar_select %p24_p1, %s1648_s14, %s26_s19  }
   0xb   : > { %p35_p5 = por %p34_p2, %p33_p0  ;;  %p1719_p6 = por %p40_p4, %p39_p3 }
   0xc   : > { %p105_p7 = scmp.eq.s32.totalorder %s1701_s16, 1  ;;  %p111_p8 = scmp.eq.s32.totalorder %s1316_s17, 1 }
   0xd   : > { %p1447_p10 = scmp.lt.s32.totalorder %s1652_s15, 2  ;;  %s137_s25 = sand.u32 1, %s1648_s14  }
   0xe   : > { %p1726_p11 = por %p105_p7, %p33_p0  ;;  %p1730_p12 = por %p111_p8, %p39_p3 }
   0xf   : > { %s1433_s26 = smul.u32 1280, %s1652_s15  ;;  %p1741_p13 = pnand %p1447_p10, %p35_p5 }
  0x10   : > { %s2444_s23 = scalar_select %p1726_p11, 1, 0 }
  0x11   : > { %s2445_s24 = scalar_select %p1730_p12, 1, 0 }
  0x12   : > { %s1432_s27 = smul.u32 80, %s137_s25  ;;  %s1739_s30 = scalar_lea.hbm %s2438_s0, %s1433_s26 }
  0x13   : > { %s138_s7 = scalar_lea.sflag [#allocation3], %s137_s25  ;;  %s1556_s8 = scalar_lea.hbm %s1739_s30, 1280 }
  0x14   : > { %s141_s5 = scalar_lea.vmem [#allocation2], %s1432_s27  ;;  %p1557_p2 = scmp.ne.s32.totalorder %s1739_s30, %s1556_s8 }
  0x15   : > { %s149_s6 = sshll.u32 %s141_s5, 4  ;;  %p1558_p3 = pneg %p1741_p13  ;;  %s1746_s6 = int_to_ptr.vmem [resolvable:$true] %s149_s6 }
  0x16   : > { %s1561_s11 = scalar_lea.hbm %s2438_s0, 2560  ;;  %p1562_p7 = scmp.lt.u32.totalorder %s1739_s30, %s2438_s0 }
  0x17   : > { %p1559_p4 = pnand %p1558_p3, %p1557_p2  ;;  %p1563_p8 = scmp.lt.u32.totalorder %s1561_s11, %s1556_s8 }
  0x18   : > { %p1565_p9 = scmp.lt.u32.totalorder %s1556_s8, %s1739_s30 }
  0x19   : > { %p1560_p5 = pneg %p1559_p4  ;;  %p1564_p10 = por %p1563_p8, %p1562_p7 }
  0x1b   : > { %p1566_p0 = por %p1565_p9, %p1564_p10 }
  0x1d   : > { %p1567_p1 = pnand %p1566_p0, %p1560_p5 }
  0x1f   : > { %1570 = shalt.err (!%p1567_p1)
}
  0x20   : > { %s1571_s20 = scalar_lea.vmem %s1746_s6, 1280  ;;  %s1654_s25 = smov [#allocation2]  }
  0x21   : > { %p1572_p2 = scmp.ne.s32.totalorder %s1746_s6, %s1571_s20  ;;  %s1576_s26 = sshll.u32 %s1654_s25, 4  ;;  %s1577_s26 = int_to_ptr.vmem [resolvable:$false] %s1576_s26 }
  0x22   : > { %s1578_s27 = scalar_lea.vmem %s1577_s26, 2560  ;;  %p1579_p11 = scmp.lt.s32.totalorder %s1746_s6, %s1577_s26 }
  0x23   : > { %p1574_p4 = pnand %p1572_p2, %p1558_p3  ;;  %p1580_p7 = scmp.lt.s32.totalorder %s1578_s27, %s1571_s20 }
  0x25   : > { %p1575_p12 = pneg %p1574_p4  ;;  %p1581_p8 = por %p1580_p7, %p1579_p11 }
  0x27   : > { %p1582_p9 = pnand %p1581_p8, %p1575_p12 }
  0x29   : > { %1585 = shalt.err (!%p1582_p9)
}
  0x2a   : > { %1442 = dma.hbm_to_vmem [thread:$0]  (!%p1741_p13), %s1739_s30, 1280, %s1746_s6, %s138_s7  }
  0x2b   : > { %p2447_p0 = scmp.lt.s32.totalorder %s1652_s15, 3  ;;  %p2448_p1 = scmp.ge.s32.totalorder %s1652_s15, 1 }
  0x2d   : > { %p155_p3 = pnand %p2448_p1, %p2447_p0 }
  0x2e   : > { %s1779_s28 = sand.u32 (!%p155_p3), 1, %s1644_s13  }
  0x2f   : > { %158 = sbr.rel (%p155_p3) target bundleno = 495 (0x1ef), region = 32  ;;  %s161_s5 = scalar_lea.sflag (!%p155_p3), [#allocation3], %s1779_s28 }
  0x30   : > { %s1434_s29 = smul.u32 (!%p155_p3), 80, %s1779_s28 }
  0x32   : > { %s1783_s8 = scalar_lea.vmem (!%p155_p3), [#allocation2], %s1434_s29 }
  0x36   : > { %1631 = dma.done.wait (%p1719_p6), %s161_s5, 1280  }
  0x37   : > { %1633 = vsyncadd (%p1719_p6), %s161_s5, 4294966016  ;;  %v1790_v0 = vld [vmem:[%s1783_s8 + $0x8] sm:$0xff]  ;;  %v1793_v1 = vld [vmem:[%s1783_s8] sm:$0xff]  ;;  %s1655_s30 = smov 127   ;;  %s1656_s22 = smov 126   ;;  %v1657_v16 = vmov 0.0  }
  0x38   : > { %237 = vrot.lane.b32.xlu1 %v1790_v0, %s1655_s30  ;;  %233 = vrot.lane.b32.xlu0 %v1793_v1, %s1655_s30  ;;  %v1801_v2 = vcombine.low %v1790_v0, %v1790_v0  ;;  %v1805_v3 = vcombine.high %v1793_v1, %v1793_v1  ;;  %v1808_v4 = vld [vmem:[%s1783_s8 + $0x10] sm:$0xff]  ;;  %v1825_v7 = vcombine.high %v1790_v0, %v1790_v0  ;;  %v1839_v11 = vld [vmem:[%s1783_s8 + $0x18] sm:$0xff]  ;;  %v1658_v40 = vmov 0   ;;  %s1321_s10 = sshll.u32 %s1779_s28, 7  ;;  %s1367_s17 = sshll.u32 %s1701_s16, 11 }
  0x39   : > { %v1816_v5 = vcombine.low %v1808_v4, %v1808_v4  ;;  %v222_v8 = vcombine.low %v1793_v1, %v1793_v1  ;;  %v1836_v10 = vcombine.high %v1808_v4, %v1808_v4  ;;  %v1848_v13 = vcombine.low %v1839_v11, %v1839_v11  ;;  %v1856_v15 = vld [vmem:[%s1783_s8 + $0x20] sm:$0xff]  ;;  %641 = vmatprep.mubr.f32.mxu0 %v1657_v16  ;;  %v1884_v20 = vld [vmem:[%s1783_s8 + $0x28] sm:$0xff]  ;;  %v1902_v24 = vld [vmem:[%s1783_s8 + $0x30] sm:$0xff]  ;;  %s2319_s11 = scalar_lea.vmem [#allocation5], %s1321_s10  ;;  %s2390_s25 = scalar_lea.hbm %s2441_s3, %s1367_s17 }
  0x3a   : > { %v1485_v6 = vpack.i.bf16 %v1793_v1, %v1805_v3  ;;  %712 = vmatprep.mubr.f32.mxu1 %v1657_v16  ;;  %v1865_v17 = vcombine.low %v1856_v15, %v1856_v15  ;;  %v1873_v18 = vcombine.high %v1839_v11, %v1839_v11  ;;  %v1881_v19 = vcombine.high %v1856_v15, %v1856_v15  ;;  %v1928_v28 = vld [vmem:[%s1783_s8 + $0x38] sm:$0xff]  ;;  %v1946_v32 = vld [vmem:[%s1783_s8 + $0x40] sm:$0xff]  ;;  %v196_v38 = vld [vmem:[%s1783_s8 + $0x48] sm:$0xff]  ;;  %s1246_s19 = sshll.u32 %s2319_s11, 4  ;;  %s1232_s26 = scalar_lea.sflag [#allocation4], %s1779_s28  ;;  %s2392_s19 = int_to_ptr.vmem [resolvable:$true] %s1246_s19 }
  0x3b   : > { %v1490_v9 = vpack.i.bf16 %v1825_v7, %v222_v8  ;;  %v1495_v12 = vpack.i.bf16 %v1805_v3, %v1836_v10  ;;  %v1500_v14 = vpack.i.bf16 %v1816_v5, %v1801_v2  ;;  %v1894_v22 = vcombine.low %v1884_v20, %v1884_v20  ;;  %1535 = vset.pattern.permute.xlu1 %v1658_v40  ;;  %v1145_v41 = vld [vmem:[%s2440_s2] sm:$0xf]  ;;  %s1586_s27 = scalar_lea.vmem %s2392_s19, 2048  ;;  %p2449_p11 = scmp.ne.s32.totalorder %s2444_s23, 0 }
  0x3c   : > { %302 = vrot.lane.b32.xlu1 %v1790_v0, %s1656_s22  ;;  %235 = vrot.lane.b32.xlu0 %v1801_v2, %s1655_s30  ;;  %v1505_v21 = vpack.i.bf16 %v1881_v19, %v1873_v18  ;;  %v1510_v23 = vpack.i.bf16 %v1865_v17, %v1848_v13  ;;  %v1909_v25 = vcombine.low %v1902_v24, %v1902_v24  ;;  %vm265_vm0 = vcmask 1039360   ;;  %p1587_p6 = scmp.ne.s32.totalorder %s2392_s19, %s1586_s27  ;;  %s1659_s29 = smov [#allocation5]  }
  0x3d   : > { %v1917_v26 = vcombine.high %v1884_v20, %v1884_v20  ;;  %v1925_v27 = vcombine.high %v1902_v24, %v1902_v24  ;;  %v1938_v30 = vcombine.low %v1928_v28, %v1928_v28  ;;  %v1953_v33 = vcombine.low %v1946_v32, %v1946_v32  ;;  %1536 = vset.pattern.permute.xlu0 %v1658_v40  ;;  %s1590_s5 = sshll.u32 %s1659_s29, 4  ;;  %s1591_s5 = int_to_ptr.vmem [resolvable:$false] %s1590_s5 }
  0x3e   : > { %v1520_v31 = vpack.i.bf16 %v1909_v25, %v1894_v22  ;;  %v1961_v34 = vcombine.high %v1928_v28, %v1928_v28  ;;  %v1965_v35 = vcombine.high %v1946_v32, %v1946_v32  ;;  %v476_v39 = vcombine.low %v196_v38, %v196_v38  ;;  %p1588_p12 = pnand %p1587_p6, %p2449_p11  ;;  %s1592_s8 = scalar_lea.vmem %s1591_s5, 4096 }
  0x3f   : > { %v1515_v29 = vpack.i.bf16 %v1925_v27, %v1917_v26  ;;  %v1530_v37 = vpack.i.bf16 %v1953_v33, %v1938_v30  ;;  %vm332_vm1 = vcmask 1031168   ;;  %vm489_vm2 = vcmask 1043456   ;;  %p1593_p5 = scmp.lt.s32.totalorder %s2392_s19, %s1591_s5  ;;  %p1594_p10 = scmp.lt.s32.totalorder %s1592_s8, %s1586_s27 }
  0x40   : > { %239 = vrot.lane.b32.xlu1 %v1816_v5, %s1655_s30  ;;  %1486 = vrot.lane.b32.xlu0 %v1485_v6, %s1656_s22  ;;  %v1525_v36 = vpack.i.bf16 %v1965_v35, %v1961_v34  ;;  %vm541_vm3 = vcmask 293888   ;;  %p1589_p13 = pneg %p1588_p12 }
  0x41   : > { %p1595_p2 = por %p1594_p10, %p1593_p5 }
  0x43   : > { %p1596_p4 = pnand %p1595_p2, %p1589_p13 }
  0x44   : > { %306 = vrot.lane.b32.xlu1 %v1808_v4, %s1656_s22  ;;  %304 = vrot.lane.b32.xlu0 %v1825_v7, %s1656_s22 }
  0x48   : > { %241 = vrot.lane.b32.xlu1 %v1808_v4, %s1655_s30  ;;  %1491 = vrot.lane.b32.xlu0 %v1490_v9, %s1655_s30 }
  0x4c   : > { %1496 = vrot.lane.b32.xlu1 %v1495_v12, %s1655_s30  ;;  %243 = vrot.lane.b32.xlu0 %v1848_v13, %s1655_s30 }
  0x50   : > { %245 = vrot.lane.b32.xlu1 %v1839_v11, %s1655_s30  ;;  %1501 = vrot.lane.b32.xlu0 %v1500_v14, %s1656_s22 }
  0x54   : > { %308 = vrot.lane.b32.xlu1 %v1836_v10, %s1656_s22  ;;  %247 = vrot.lane.b32.xlu0 %v1865_v17, %s1655_s30 }
  0x58   : > { %312 = vrot.lane.b32.xlu1 %v1873_v18, %s1656_s22  ;;  %310 = vrot.lane.b32.xlu0 %v1839_v11, %s1656_s22 }
  0x5c   : > { %249 = vrot.lane.b32.xlu1 %v1856_v15, %s1655_s30  ;;  %314 = vrot.lane.b32.xlu0 %v1856_v15, %s1656_s22 }
  0x60   : > { %1506 = vrot.lane.b32.xlu1 %v1505_v21, %s1655_s30  ;;  %251 = vrot.lane.b32.xlu0 %v1894_v22, %s1655_s30 }
  0x64   : > { %253 = vrot.lane.b32.xlu1 %v1884_v20, %s1655_s30  ;;  %1511 = vrot.lane.b32.xlu0 %v1510_v23, %s1656_s22 }
  0x68   : > { %316 = vrot.lane.b32.xlu1 %v1881_v19, %s1656_s22  ;;  %255 = vrot.lane.b32.xlu0 %v1909_v25, %s1655_s30 }
  0x6c   : > { %320 = vrot.lane.b32.xlu1 %v1917_v26, %s1656_s22  ;;  %318 = vrot.lane.b32.xlu0 %v1884_v20, %s1656_s22 }
  0x70   : > { %257 = vrot.lane.b32.xlu1 %v1902_v24, %s1655_s30  ;;  %322 = vrot.lane.b32.xlu0 %v1902_v24, %s1656_s22 }
  0x74   : > { %1516 = vrot.lane.b32.xlu1 %v1515_v29, %s1655_s30  ;;  %259 = vrot.lane.b32.xlu0 %v1938_v30, %s1655_s30 }
  0x78   : > { %261 = vrot.lane.b32.xlu1 %v1928_v28, %s1655_s30  ;;  %1521 = vrot.lane.b32.xlu0 %v1520_v31, %s1656_s22 }
  0x7c   : > { %324 = vrot.lane.b32.xlu1 %v1925_v27, %s1656_s22  ;;  %263 = vrot.lane.b32.xlu0 %v1953_v33, %s1655_s30 }
  0x80   : > { %328 = vrot.lane.b32.xlu1 %v1961_v34, %s1656_s22  ;;  %326 = vrot.lane.b32.xlu0 %v1928_v28, %s1656_s22 }
  0x84   : > { %1526 = vrot.lane.b32.xlu1 %v1525_v36, %s1655_s30  ;;  %330 = vrot.lane.b32.xlu0 %v1946_v32, %s1656_s22 }
  0x88   : > { %1531 = vrot.lane.b32.xlu1 %v1530_v37, %s1656_s22  ;;  %390 = vrot.lane.b32.xlu0 %v1946_v32, %s1655_s30 }
  0x8c   : > { %483 = vrot.lane.b32.xlu1 %v1965_v35, %s1656_s22  ;;  %477 = vrot.lane.b32.xlu0 %v476_v39, %s1655_s30 }
  0x90   : > { %485 = vrot.lane.b32.xlu0 %v196_v38, %s1656_s22  ;;  %1148 = vperm.xlu1 %1535, %v1145_v41  }
  0xaa   : > { %v238_v42 = vpop.permute.xlu1 %237  ;;  %v234_v43 = vpop.permute.xlu0 %233 }
  0xae   : > { %v303_v44 = vpop.permute.xlu1 %302  ;;  %v236_v45 = vpop.permute.xlu0 %235 }
  0xaf   : > { %v1990_v48 = vsel %vm265_vm0, %v234_v43, %v236_v45  ;;  %v1993_v50 = vsel %vm265_vm0, %v236_v45, %v238_v42 }
  0xb0   : > { %v491_v55 = vsel %vm489_vm2, %v1805_v3, %v1990_v48  ;;  %v492_v63 = vsel %vm489_vm2, %v1790_v0, %v1993_v50 }
  0xb2   : > { %v240_v46 = vpop.permute.xlu1 %239  ;;  %v1487_v47 = vpop.permute.xlu0 %1486 }
  0xb3   : > { %v1488_v49 = vunpack.i.l.bf16 %v1487_v47  ;;  %v1996_v51 = vsel %vm265_vm0, %v238_v42, %v240_v46  ;;  %v1489_v57 = vunpack.i.h.bf16 %v1487_v47 }
  0xb4   : > { %v493_v61 = vsel %vm489_vm2, %v1825_v7, %v1996_v51 }
  0xb5   : > { %v334_v52 = vsel %vm332_vm1, %v1488_v49, %v303_v44  ;;  %v333_v7 = vsel %vm332_vm1, %v1489_v57, %v1488_v49 }
  0xb6   : > { %v1999_v53 = vpop.permute.xlu1 %306  ;;  %v305_v54 = vpop.permute.xlu0 %304  ;;  %v507_v56 = vsel %vm489_vm2, %v334_v52, %v1801_v2 }
  0xb7   : > { %v2007_v58 = vsel %vm332_vm1, %v303_v44, %v305_v54  ;;  %v336_v59 = vsel %vm332_vm1, %v305_v54, %v1999_v53  ;;  %v1368_v60 = vpack.c.bf16 %v507_v56, %v491_v55 }
  0xb8   : > { %v509_v62 = vsel %vm489_vm2, %v336_v59, %v1816_v5  ;;  %v508_v2 = vsel %vm489_vm2, %v2007_v58, %v1790_v0  ;;  %v506_v0 = vsel %vm489_vm2, %v333_v7, %v1793_v1 }
  0xb9   : > { %1369 = vmatprep.subr.bf16.mxu0 %v1368_v60  ;;  %v1376_v3 = vpack.c.bf16 %v509_v62, %v493_v61  ;;  %v1378_v6 = vpack.c.bf16 %v508_v2, %v492_v63 }
  0xba   : > { %v242_v8 = vpop.permute.xlu1 %241  ;;  %v1492_v9 = vpop.permute.xlu0 %1491 }
  0xbb   : > { %v1493_v12 = vunpack.i.l.bf16 %v1492_v9  ;;  %1377 = vmatprep.subr.bf16.mxu1 %v1376_v3  ;;  %v1494_v29 = vunpack.i.h.bf16 %v1492_v9  ;;  %v2038_v41 = vsel %vm265_vm0, %v240_v46, %v242_v8 }
  0xbc   : > { %1379 = vmatpush1.bf16.msra.mxu1 %v1378_v6 }
  0xbd   : > { %v266_v5 = vsel %vm265_vm0, %v1493_v12, %v234_v43  ;;  %v395_v43 = vsel %vm265_vm0, %v238_v42, %v1494_v29  ;;  %v396_v47 = vsel %vm265_vm0, %v1494_v29, %v242_v8 }
  0xbe   : > { %v2024_v14 = vpop.permute.xlu1 %1496  ;;  %v244_v21 = vpop.permute.xlu0 %243  ;;  %v490_v23 = vsel %vm489_vm2, %v1793_v1, %v266_v5 }
  0xbf   : > { %v1370_v31 = vpack.c.bf16 %v506_v0, %v490_v23  ;;  %v1499_v36 = vunpack.i.h.bf16 %v2024_v14  ;;  %v1498_v37 = vunpack.i.l.bf16 %v2024_v14  ;;  %v2033_v38 = vsel %vm265_vm0, %v242_v8, %v244_v21 }
  0xc0   : > { %v495_v54 = vsel %vm489_vm2, %v1836_v10, %v2033_v38  ;;  %v494_v10 = vsel %vm489_vm2, %v1808_v4, %v2038_v41 }
  0xc1   : > { %1371 = vmatpush1.bf16.msra.mxu0 %v1370_v31  ;;  %v394_v49 = vsel %vm265_vm0, %v1499_v36, %v238_v42  ;;  %v397_v52 = vsel %vm265_vm0, %v242_v8, %v1498_v37 }
  0xc2   : > { %v2035_v39 = vpop.permute.xlu1 %245  ;;  %v1502_v40 = vpop.permute.xlu0 %1501 }
  0xc3   : > { %v1504_v45 = vunpack.i.h.bf16 %v1502_v40  ;;  %v1503_v1 = vunpack.i.l.bf16 %v1502_v40 }
  0xc5   : > { %v444_v55 = vsel %vm332_vm1, %v303_v44, %v1504_v45  ;;  %v445_v46 = vsel %vm332_vm1, %v1504_v45, %v1999_v53  ;;  %v442_v56 = vsel %vm332_vm1, %v1489_v57, %v1503_v1  ;;  %v443_v60 = vsel %vm332_vm1, %v1503_v1, %v303_v44 }
  0xc6   : > { %v309_v62 = vpop.permute.xlu1 %308  ;;  %v248_v2 = vpop.permute.xlu0 %247  ;;  %v523_v42 = vsel %vm489_vm2, %v395_v43, %v443_v60  ;;  %v525_v3 = vsel %vm489_vm2, %v397_v52, %v445_v46  ;;  %v522_v6 = vsel %vm489_vm2, %v394_v49, %v442_v56  ;;  %v524_v8 = vsel %vm489_vm2, %v396_v47, %v444_v55 }
  0xc7   : > { %v1372_v9 = vpack.c.bf16 %v493_v61, %v523_v42  ;;  %v1380_v12 = vpack.c.bf16 %v495_v54, %v525_v3  ;;  %v1374_v7 = vpack.c.bf16 %v492_v63, %v522_v6  ;;  %v1382_v57 = vpack.c.bf16 %v494_v10, %v524_v8  ;;  %v2074_v63 = vld [vmem:[%s2439_s1] sm:$0xf] }
  0xc8   : > { %v337_v44 = vsel %vm332_vm1, %v1999_v53, %v309_v62  ;;  %v398_v60 = vsel %vm265_vm0, %v1498_v37, %v2035_v39 }
  0xc9   : > { %1373 = vmatprep.subr.bf16.mxu0 %v1372_v9  ;;  %1381 = vmatprep.subr.bf16.mxu1 %v1380_v12  ;;  %v510_v29 = vsel %vm489_vm2, %v337_v44, %v1808_v4  ;;  %v2084_v4 = vsel %vm265_vm0, %v244_v21, %v2035_v39 }
  0xca   : > { %v313_v5 = vpop.permute.xlu1 %312  ;;  %v311_v23 = vpop.permute.xlu0 %310  ;;  %1375 = vmatpush1.bf16.msra.mxu0 %v1374_v7  ;;  %1383 = vmatpush1.bf16.msra.mxu1 %v1382_v57  ;;  %v1386_v45 = vpack.c.bf16 %v510_v29, %v494_v10  ;;  %v496_v47 = vsel %vm489_vm2, %v1839_v11, %v2084_v4 }
  0xcb   : > { %1322 = vmatprep.subr.msk.mxu0 %vm489_vm2, %v336_v59  ;;  %v338_v0 = vsel %vm332_vm1, %v309_v62, %v311_v23  ;;  %v2068_v61 = vsel %vm332_vm1, %v311_v23, %v313_v5  ;;  %v2080_v59 = vsel %vm265_vm0, %v2035_v39, %v248_v2 }
  0xcc   : > { %1325 = vmatprep.subr.msk.mxu1 %vm489_vm2, %v338_v0  ;;  %v511_v31 = vsel %vm489_vm2, %v338_v0, %v1848_v13  ;;  %v512_v13 = vsel %vm489_vm2, %v2068_v61, %v1839_v11 }
  0xcd   : > { %v1384_v36 = vpack.c.bf16 %v511_v31, %v495_v54  ;;  %v1394_v55 = vpack.c.bf16 %v512_v13, %v496_v47 }
  0xce   : > { %v250_v40 = vpop.permute.xlu1 %249  ;;  %v2086_v43 = vpop.permute.xlu0 %314  ;;  %1323 = vmatpush1.msk.msra.mxu0 %vm489_vm2, %v2007_v58  ;;  %1326 = vmatpush1.msk.msra.mxu1 %vm489_vm2, %v337_v44  ;;  %v497_v58 = vsel %vm489_vm2, %v1873_v18, %v2080_v59 }
  0xcf   : > { %v340_v1 = vsel %vm332_vm1, %v313_v5, %v2086_v43  ;;  %1324 = vmatmul.mubr.msk.f32.vlgmr.msra.gmra.mrb[0].mxu0 %vm541_vm3, %v2074_v63  ;;  %1327 = vmatmul.mubr.msk.f32.vlgmr.msra.gmra.mrb[0].mxu1 %vm541_vm3, %v2074_v63  ;;  %v2113_v18 = vsel %vm265_vm0, %v248_v2, %v250_v40 }
  0xd0   : > { %1385 = vmatprep.subr.bf16.mxu0 %v1384_v36  ;;  %v513_v21 = vsel %vm489_vm2, %v340_v1, %v1865_v17  ;;  %783 = vmatprep.mubr.f32.mxu0 %v1657_v16  ;;  %v498_v2 = vsel %vm489_vm2, %v1856_v15, %v2113_v18 }
  0xd1   : > { %1387 = vmatpush1.bf16.msra.mxu0 %v1386_v45  ;;  %v1392_v49 = vpack.c.bf16 %v513_v21, %v497_v58  ;;  %854 = vmatprep.mubr.f32.mxu1 %v1657_v16 }
  0xd2   : > { %v2110_v52 = vpop.permute.xlu1 %1506  ;;  %v252_v54 = vpop.permute.xlu0 %251 }
  0xd3   : > { %1393 = vmatprep.subr.bf16.mxu1 %v1392_v49  ;;  %v1509_v17 = vunpack.i.h.bf16 %v2110_v52  ;;  %v1508_v46 = vunpack.i.l.bf16 %v2110_v52  ;;  %v2133_v10 = vsel %vm265_vm0, %v250_v40, %v252_v54 }
  0xd4   : > { %1395 = vmatpush1.bf16.msra.mxu1 %v1394_v55  ;;  %v499_v29 = vsel %vm489_vm2, %v1881_v19, %v2133_v10 }
  0xd5   : > { %v401_v3 = vsel %vm265_vm0, %v250_v40, %v1509_v17  ;;  %v399_v6 = vsel %vm265_vm0, %v2035_v39, %v1508_v46  ;;  %v400_v8 = vsel %vm265_vm0, %v1508_v46, %v250_v40 }
  0xd6   : > { %v2117_v56 = vpop.permute.xlu1 %253  ;;  %v1512_v11 = vpop.permute.xlu0 %1511 }
  0xd7   : > { %v1514_v62 = vunpack.i.h.bf16 %v1512_v11  ;;  %v1513_v42 = vunpack.i.l.bf16 %v1512_v11 }
  0xd9   : > { %v448_v14 = vsel %vm332_vm1, %v311_v23, %v1514_v62  ;;  %v449_v37 = vsel %vm332_vm1, %v1514_v62, %v2086_v43  ;;  %v446_v9 = vsel %vm332_vm1, %v1999_v53, %v1513_v42  ;;  %v447_v12 = vsel %vm332_vm1, %v1513_v42, %v311_v23 }
  0xda   : > { %v317_v7 = vpop.permute.xlu1 %316  ;;  %v528_v57 = vsel %vm489_vm2, %v400_v8, %v448_v14  ;;  %v256_v44 = vpop.permute.xlu0 %255  ;;  %v527_v39 = vsel %vm489_vm2, %v399_v6, %v447_v12  ;;  %v529_v5 = vsel %vm489_vm2, %v401_v3, %v449_v37  ;;  %v526_v0 = vsel %vm489_vm2, %v398_v60, %v446_v9 }
  0xdb   : > { %v1398_v31 = vpack.c.bf16 %v498_v2, %v528_v57  ;;  %v1388_v36 = vpack.c.bf16 %v497_v58, %v527_v39  ;;  %v1396_v40 = vpack.c.bf16 %v499_v29, %v529_v5  ;;  %v1390_v53 = vpack.c.bf16 %v496_v47, %v526_v0 }
  0xdc   : > { %v341_v23 = vsel %vm332_vm1, %v2086_v43, %v317_v7  ;;  %v2162_v49 = vsel %vm265_vm0, %v2117_v56, %v256_v44  ;;  %v402_v37 = vsel %vm265_vm0, %v1509_v17, %v2117_v56 }
  0xdd   : > { %1389 = vmatprep.subr.bf16.mxu0 %v1388_v36  ;;  %1397 = vmatprep.subr.bf16.mxu1 %v1396_v40  ;;  %v514_v19 = vsel %vm489_vm2, %v341_v23, %v1856_v15 }
  0xde   : > { %v321_v45 = vpop.permute.xlu1 %320  ;;  %v319_v13 = vpop.permute.xlu0 %318  ;;  %1391 = vmatpush1.bf16.msra.mxu0 %v1390_v53  ;;  %1399 = vmatpush1.bf16.msra.mxu1 %v1398_v31  ;;  %v1402_v15 = vpack.c.bf16 %v514_v19, %v498_v2 }
  0xdf   : > { %1328 = vmatprep.subr.msk.mxu0 %vm489_vm2, %v340_v1  ;;  %v342_v21 = vsel %vm332_vm1, %v317_v7, %v319_v13  ;;  %v2155_v58 = vsel %vm332_vm1, %v319_v13, %v321_v45  ;;  %v2166_v1 = vsel %vm265_vm0, %v252_v54, %v2117_v56  ;;  %v501_v54 = vsel %vm489_vm2, %v1917_v26, %v2162_v49 }
  0xe0   : > { %1331 = vmatprep.subr.msk.mxu1 %vm489_vm2, %v342_v21  ;;  %v515_v47 = vsel %vm489_vm2, %v342_v21, %v1894_v22  ;;  %v516_v22 = vsel %vm489_vm2, %v2155_v58, %v1884_v20  ;;  %v500_v62 = vsel %vm489_vm2, %v1884_v20, %v2166_v1 }
  0xe1   : > { %v1400_v55 = vpack.c.bf16 %v515_v47, %v499_v29  ;;  %v1410_v6 = vpack.c.bf16 %v516_v22, %v500_v62 }
  0xe2   : > { %v258_v46 = vpop.permute.xlu1 %257  ;;  %v2168_v11 = vpop.permute.xlu0 %322  ;;  %1329 = vmatpush1.msk.msra.mxu0 %vm489_vm2, %v2068_v61  ;;  %1332 = vmatpush1.msk.msra.mxu1 %vm489_vm2, %v341_v23 }
  0xe3   : > { %v344_v60 = vsel %vm332_vm1, %v321_v45, %v2168_v11  ;;  %1330 = vmatmul.mubr.msk.f32.vlgmr.msra.gmra.mrb[2].mxu0 %vm541_vm3, %v2074_v63  ;;  %1333 = vmatmul.mubr.msk.f32.vlgmr.msra.gmra.mrb[2].mxu1 %vm541_vm3, %v2074_v63  ;;  %v2195_v26 = vsel %vm265_vm0, %v256_v44, %v258_v46 }
  0xe4   : > { %1401 = vmatprep.subr.bf16.mxu0 %v1400_v55  ;;  %v517_v61 = vsel %vm489_vm2, %v344_v60, %v1909_v25  ;;  %925 = vmatprep.mubr.f32.mxu0 %v1657_v16  ;;  %v502_v7 = vsel %vm489_vm2, %v1902_v24, %v2195_v26 }
  0xe5   : > { %1403 = vmatpush1.bf16.msra.mxu0 %v1402_v15  ;;  %v1408_v42 = vpack.c.bf16 %v517_v61, %v501_v54  ;;  %996 = vmatprep.mubr.f32.mxu1 %v1657_v16 }
  0xe6   : > { %v2191_v2 = vpop.permute.xlu1 %1516  ;;  %v260_v3 = vpop.permute.xlu0 %259 }
  0xe7   : > { %1409 = vmatprep.subr.bf16.mxu1 %v1408_v42  ;;  %v1519_v25 = vunpack.i.h.bf16 %v2191_v2  ;;  %v1518_v8 = vunpack.i.l.bf16 %v2191_v2  ;;  %v2215_v5 = vsel %vm265_vm0, %v258_v46, %v260_v3 }
  0xe8   : > { %1411 = vmatpush1.bf16.msra.mxu1 %v1410_v6  ;;  %v503_v45 = vsel %vm489_vm2, %v1925_v27, %v2215_v5 }
  0xe9   : > { %v405_v57 = vsel %vm265_vm0, %v258_v46, %v1519_v25  ;;  %v403_v44 = vsel %vm265_vm0, %v2117_v56, %v1518_v8  ;;  %v404_v39 = vsel %vm265_vm0, %v1518_v8, %v258_v46 }
  0xea   : > { %v2199_v20 = vpop.permute.xlu1 %261  ;;  %v1522_v14 = vpop.permute.xlu0 %1521 }
  0xeb   : > { %v1524_v9 = vunpack.i.h.bf16 %v1522_v14  ;;  %v1523_v12 = vunpack.i.l.bf16 %v1522_v14 }
  0xed   : > { %v452_v52 = vsel %vm332_vm1, %v319_v13, %v1524_v9  ;;  %v453_v17 = vsel %vm332_vm1, %v1524_v9, %v2168_v11  ;;  %v450_v0 = vsel %vm332_vm1, %v2086_v43, %v1523_v12  ;;  %v451_v29 = vsel %vm332_vm1, %v1523_v12, %v319_v13 }
  0xee   : > { %v325_v31 = vpop.permute.xlu1 %324  ;;  %v532_v36 = vsel %vm489_vm2, %v404_v39, %v452_v52  ;;  %v264_v40 = vpop.permute.xlu0 %263  ;;  %v531_v56 = vsel %vm489_vm2, %v403_v44, %v451_v29  ;;  %v533_v53 = vsel %vm489_vm2, %v405_v57, %v453_v17  ;;  %v530_v23 = vsel %vm489_vm2, %v402_v37, %v450_v0 }
  0xef   : > { %v1414_v21 = vpack.c.bf16 %v502_v7, %v532_v36  ;;  %v1404_v19 = vpack.c.bf16 %v501_v54, %v531_v56  ;;  %v1412_v47 = vpack.c.bf16 %v503_v45, %v533_v53  ;;  %v1406_v43 = vpack.c.bf16 %v500_v62, %v530_v23 }
  0xf0   : > { %v345_v13 = vsel %vm332_vm1, %v2168_v11, %v325_v31  ;;  %v2242_v61 = vsel %vm265_vm0, %v2199_v20, %v264_v40 }
  0xf1   : > { %1405 = vmatprep.subr.bf16.mxu0 %v1404_v19  ;;  %1413 = vmatprep.subr.bf16.mxu1 %v1412_v47  ;;  %v518_v27 = vsel %vm489_vm2, %v345_v13, %v1902_v24 }
  0xf2   : > { %v329_v55 = vpop.permute.xlu1 %328  ;;  %v327_v46 = vpop.permute.xlu0 %326  ;;  %1407 = vmatpush1.bf16.msra.mxu0 %v1406_v43  ;;  %1415 = vmatpush1.bf16.msra.mxu1 %v1414_v21  ;;  %v1418_v24 = vpack.c.bf16 %v518_v27, %v502_v7 }
  0xf3   : > { %1334 = vmatprep.subr.msk.mxu0 %vm489_vm2, %v344_v60  ;;  %v346_v15 = vsel %vm332_vm1, %v325_v31, %v327_v46  ;;  %v347_v22 = vsel %vm332_vm1, %v327_v46, %v329_v55  ;;  %v2246_v60 = vsel %vm265_vm0, %v260_v3, %v2199_v20  ;;  %v505_v3 = vsel %vm489_vm2, %v1961_v34, %v2242_v61 }
  0xf4   : > { %1337 = vmatprep.subr.msk.mxu1 %vm489_vm2, %v346_v15  ;;  %v519_v54 = vsel %vm489_vm2, %v346_v15, %v1938_v30  ;;  %v520_v8 = vsel %vm489_vm2, %v347_v22, %v1928_v28  ;;  %v504_v37 = vsel %vm489_vm2, %v1928_v28, %v2246_v60 }
  0xf5   : > { %v1416_v62 = vpack.c.bf16 %v519_v54, %v503_v45  ;;  %v1426_v34 = vpack.c.bf16 %v520_v8, %v504_v37 }
  0xf6   : > { %v1527_v42 = vpop.permute.xlu1 %1526  ;;  %v331_v6 = vpop.permute.xlu0 %330  ;;  %1335 = vmatpush1.msk.msra.mxu0 %vm489_vm2, %v2155_v58  ;;  %1338 = vmatpush1.msk.msra.mxu1 %vm489_vm2, %v345_v13 }
  0xf7   : > { %v348_v30 = vsel %vm332_vm1, %v329_v55, %v331_v6  ;;  %1336 = vmatmul.mubr.msk.f32.vlgmr.msra.gmra.mrb[4].mxu0 %vm541_vm3, %v2074_v63  ;;  %v1528_v14 = vunpack.i.l.bf16 %v1527_v42  ;;  %1339 = vmatmul.mubr.msk.f32.vlgmr.msra.gmra.mrb[4].mxu1 %vm541_vm3, %v2074_v63  ;;  %v1529_v12 = vunpack.i.h.bf16 %v1527_v42 }
  0xf8   : > { %1417 = vmatprep.subr.bf16.mxu0 %v1416_v62  ;;  %v521_v58 = vsel %vm489_vm2, %v348_v30, %v1953_v33  ;;  %1067 = vmatprep.mubr.f32.mxu0 %v1657_v16  ;;  %v406_v33 = vsel %vm265_vm0, %v1519_v25, %v2199_v20 }
  0xf9   : > { %1419 = vmatpush1.bf16.msra.mxu0 %v1418_v24  ;;  %v1424_v9 = vpack.c.bf16 %v521_v58, %v505_v3  ;;  %1138 = vmatprep.mubr.f32.mxu1 %v1657_v16  ;;  %v407_v28 = vsel %vm265_vm0, %v2199_v20, %v1528_v14 }
  0xfa   : > { %v1532_v7 = vpop.permute.xlu1 %1531  ;;  %v391_v57 = vpop.permute.xlu0 %390 }
  0xfb   : > { %v1534_v44 = vunpack.i.h.bf16 %v1532_v7  ;;  %v1533_v39 = vunpack.i.l.bf16 %v1532_v7  ;;  %1425 = vmatprep.subr.bf16.mxu1 %v1424_v9  ;;  %v408_v52 = vsel %vm265_vm0, %v1528_v14, %v391_v57  ;;  %v409_v36 = vsel %vm265_vm0, %v391_v57, %v1529_v12 }
  0xfc   : > { %1427 = vmatpush1.bf16.msra.mxu1 %v1426_v34  ;;  %v2282_v2 = vsel %vm265_vm0, %v264_v40, %v391_v57 }
  0xfd   : > { %v454_v17 = vsel %vm332_vm1, %v2168_v11, %v1533_v39  ;;  %v455_v0 = vsel %vm332_vm1, %v1533_v39, %v327_v46  ;;  %v456_v29 = vsel %vm332_vm1, %v327_v46, %v1534_v44  ;;  %v457_v31 = vsel %vm332_vm1, %v1534_v44, %v331_v6 }
  0xfe   : > { %v478_v25 = vpop.permute.xlu0 %477  ;;  %v535_v20 = vsel %vm489_vm2, %v407_v28, %v455_v0  ;;  %v534_v56 = vsel %vm489_vm2, %v406_v33, %v454_v17  ;;  %v536_v53 = vsel %vm489_vm2, %v408_v52, %v456_v29  ;;  %v537_v19 = vsel %vm489_vm2, %v409_v36, %v457_v31  ;;  %v484_v43 = vpop.permute.xlu1 %483 }
  0xff   : > { %v480_v11 = vsel %vm265_vm0, %v391_v57, %v478_v25  ;;  %v1420_v23 = vpack.c.bf16 %v505_v3, %v535_v20  ;;  %v1422_v45 = vpack.c.bf16 %v504_v37, %v534_v56  ;;  %v538_v40 = vsel %vm489_vm2, %v1946_v32, %v2282_v2 }
 0x100   : > { %v539_v21 = vsel %vm489_vm2, %v1965_v35, %v480_v11  ;;  %v1430_v13 = vpack.c.bf16 %v538_v40, %v536_v53  ;;  %v487_v35 = vsel %vm332_vm1, %v331_v6, %v484_v43 }
 0x101   : > { %1421 = vmatprep.subr.bf16.mxu0 %v1420_v23  ;;  %v1428_v47 = vpack.c.bf16 %v539_v21, %v537_v19 }
 0x102   : > { %1423 = vmatpush1.bf16.msra.mxu0 %v1422_v45  ;;  %v486_v55 = vpop.permute.xlu0 %485 }
 0x103   : > { %1340 = vmatprep.subr.msk.mxu0 %vm489_vm2, %v348_v30  ;;  %1429 = vmatprep.subr.bf16.mxu1 %v1428_v47  ;;  %v488_v46 = vsel %vm332_vm1, %v484_v43, %v486_v55 }
 0x104   : > { %1431 = vmatpush1.bf16.msra.mxu1 %v1430_v13 }
 0x105   : > { %1343 = vmatprep.subr.msk.mxu1 %vm489_vm2, %v488_v46 }
 0x106   : > { %1341 = vmatpush1.msk.msra.mxu0 %vm489_vm2, %v347_v22 }
 0x107   : > { %1342 = vmatmul.mubr.msk.f32.vlgmr.msra.gmra.mrb[6].mxu0 %vm541_vm3, %v2074_v63 }
 0x108   : > { %1344 = vmatpush1.msk.msra.mxu1 %vm489_vm2, %v487_v35 }
 0x109   : > { %1345 = vmatmul.mubr.msk.f32.vlgmr.msra.gmra.mrb[6].mxu1 %vm541_vm3, %v2074_v63 }
 0x10f   : > { %v2304_v32 = vpop.permute.xlu1 %1148 }
 0x1a2   : > { %v643_v15 = vpop.f32.mrb[0].mxu0  ;;  %v714_v27 = vpop.f32.mrb[0].mxu1 }
 0x1a3   : > { %vm1151_vm4 = vcmp.ge.f32.partialorder %v643_v15, %v2304_v32  ;;  %vm1153_vm5 = vcmp.ge.f32.partialorder %v714_v27, %v2304_v32  ;;  %v645_v22 = vpop.f32.mrb[1].mxu0  ;;  %v716_v54 = vpop.f32.mrb[1].mxu1 }
 0x1a4   : > { %v1346_v62 = vsel %vm1151_vm4, 1.0, %v1657_v16  ;;  %v1348_v42 = vsel %vm1153_vm5, 1.0, %v1657_v16  ;;  %vm1152_vm6 = vcmp.ge.f32.partialorder %v645_v22, %v2304_v32  ;;  %vm1154_vm7 = vcmp.ge.f32.partialorder %v716_v54, %v2304_v32 }
 0x1a5   : > { %v1199_v63 = vsel %vm489_vm2, %v1346_v62, %v1990_v48  ;;  %v1201_v6 = vsel %vm489_vm2, %v1348_v42, %v1996_v51  ;;  %v1347_v24 = vsel %vm1152_vm6, 1.0, %v1657_v16  ;;  %v1349_v8 = vsel %vm1154_vm7, 1.0, %v1657_v16 }
 0x1a6   : > { %1215 = vst [vmem:[%s2319_s11] sm:$0xff] %v1199_v63  ;;  %1217 = vst [vmem:[%s2319_s11 + $0x10] sm:$0xff] %v1201_v6  ;;  %v1200_v30 = vsel %vm489_vm2, %v1347_v24, %v1993_v50  ;;  %v1202_v48 = vsel %vm489_vm2, %v1349_v8, %v2038_v41 }
 0x1a7   : > { %1216 = vst [vmem:[%s2319_s11 + $0x8] sm:$0xff] %v1200_v30  ;;  %1218 = vst [vmem:[%s2319_s11 + $0x18] sm:$0xff] %v1202_v48 }
 0x1b6   : > { %v785_v51 = vpop.f32.mrb[2].mxu0  ;;  %v856_v3 = vpop.f32.mrb[2].mxu1 }
 0x1b7   : > { %vm1155_vm8 = vcmp.ge.f32.partialorder %v785_v51, %v2304_v32  ;;  %v787_v14 = vpop.f32.mrb[3].mxu0  ;;  %vm1157_vm9 = vcmp.ge.f32.partialorder %v856_v3, %v2304_v32  ;;  %v858_v50 = vpop.f32.mrb[3].mxu1 }
 0x1b8   : > { %v1350_v58 = vsel %vm1155_vm8, 1.0, %v1657_v16  ;;  %vm1156_vm10 = vcmp.ge.f32.partialorder %v787_v14, %v2304_v32  ;;  %v1352_v37 = vsel %vm1157_vm9, 1.0, %v1657_v16  ;;  %vm1158_vm11 = vcmp.ge.f32.partialorder %v858_v50, %v2304_v32 }
 0x1b9   : > { %v1203_v41 = vsel %vm489_vm2, %v1350_v58, %v2033_v38  ;;  %v1351_v9 = vsel %vm1156_vm10, 1.0, %v1657_v16  ;;  %v1205_v12 = vsel %vm489_vm2, %v1352_v37, %v2080_v59  ;;  %v1353_v57 = vsel %vm1158_vm11, 1.0, %v1657_v16 }
 0x1ba   : > { %1219 = vst [vmem:[%s2319_s11 + $0x20] sm:$0xff] %v1203_v41  ;;  %v1204_v7 = vsel %vm489_vm2, %v1351_v9, %v2084_v4  ;;  %1221 = vst [vmem:[%s2319_s11 + $0x30] sm:$0xff] %v1205_v12  ;;  %v1206_v38 = vsel %vm489_vm2, %v1353_v57, %v2113_v18 }
 0x1bb   : > { %1220 = vst [vmem:[%s2319_s11 + $0x28] sm:$0xff] %v1204_v7  ;;  %1222 = vst [vmem:[%s2319_s11 + $0x38] sm:$0xff] %v1206_v38 }
 0x1ca   : > { %v927_v34 = vpop.f32.mrb[4].mxu0  ;;  %v998_v44 = vpop.f32.mrb[4].mxu1 }
 0x1cb   : > { %vm1159_vm12 = vcmp.ge.f32.partialorder %v927_v34, %v2304_v32  ;;  %v929_v39 = vpop.f32.mrb[5].mxu0  ;;  %vm1161_vm13 = vcmp.ge.f32.partialorder %v998_v44, %v2304_v32  ;;  %v1000_v4 = vpop.f32.mrb[5].mxu1 }
 0x1cc   : > { %v1354_v59 = vsel %vm1159_vm12, 1.0, %v1657_v16  ;;  %vm1160_vm14 = vcmp.ge.f32.partialorder %v929_v39, %v2304_v32  ;;  %v1356_v18 = vsel %vm1161_vm13, 1.0, %v1657_v16  ;;  %vm1162_vm15 = vcmp.ge.f32.partialorder %v1000_v4, %v2304_v32 }
 0x1cd   : > { %v1207_v33 = vsel %vm489_vm2, %v1354_v59, %v2133_v10  ;;  %v1355_v28 = vsel %vm1160_vm14, 1.0, %v1657_v16  ;;  %v1209_v52 = vsel %vm489_vm2, %v1356_v18, %v2162_v49  ;;  %v1357_v0 = vsel %vm1162_vm15, 1.0, %v1657_v16 }
 0x1ce   : > { %1223 = vst [vmem:[%s2319_s11 + $0x40] sm:$0xff] %v1207_v33  ;;  %v1208_v17 = vsel %vm489_vm2, %v1355_v28, %v2166_v1  ;;  %1225 = vst [vmem:[%s2319_s11 + $0x50] sm:$0xff] %v1209_v52  ;;  %v1210_v10 = vsel %vm489_vm2, %v1357_v0, %v2195_v26 }
 0x1cf   : > { %1224 = vst [vmem:[%s2319_s11 + $0x48] sm:$0xff] %v1208_v17  ;;  %1226 = vst [vmem:[%s2319_s11 + $0x58] sm:$0xff] %v1210_v10 }
 0x1da   : > { %v1069_v29 = vpop.f32.mrb[6].mxu0 }
 0x1db   : > { %vm1163_vm0 = vcmp.ge.f32.partialorder %v1069_v29, %v2304_v32  ;;  %v1071_v31 = vpop.f32.mrb[7].mxu0 }
 0x1dc   : > { %v1358_v36 = vsel %vm1163_vm0, 1.0, %v1657_v16  ;;  %vm1164_vm1 = vcmp.ge.f32.partialorder %v1071_v31, %v2304_v32  ;;  %v1140_v49 = vpop.f32.mrb[6].mxu1 }
 0x1dd   : > { %v1211_v1 = vsel %vm489_vm2, %v1358_v36, %v2215_v5  ;;  %v1359_v26 = vsel %vm1164_vm1, 1.0, %v1657_v16  ;;  %vm1165_vm3 = vcmp.ge.f32.partialorder %v1140_v49, %v2304_v32  ;;  %v1142_v25 = vpop.f32.mrb[7].mxu1 }
 0x1de   : > { %1227 = vst [vmem:[%s2319_s11 + $0x60] sm:$0xff] %v1211_v1  ;;  %v1212_v20 = vsel %vm489_vm2, %v1359_v26, %v2246_v60  ;;  %v1360_v56 = vsel %vm1165_vm3, 1.0, %v1657_v16  ;;  %vm1166_vm4 = vcmp.ge.f32.partialorder %v1142_v25, %v2304_v32 }
 0x1df   : > { %1228 = vst [vmem:[%s2319_s11 + $0x68] sm:$0xff] %v1212_v20  ;;  %v1213_v53 = vsel %vm489_vm2, %v1360_v56, %v2242_v61  ;;  %v1361_v5 = vsel %vm1166_vm4, 1.0, %v1657_v16 }
 0x1e0   : > { %1229 = vst [vmem:[%s2319_s11 + $0x70] sm:$0xff] %v1213_v53  ;;  %v1214_v60 = vsel %vm489_vm2, %v1361_v5, %v2282_v2 }
 0x1e1   : > { %1230 = vst [vmem:[%s2319_s11 + $0x78] sm:$0xff] %v1214_v60 }
 0x1e2   : > { %1599 = shalt.err (!%p1596_p4)
}
 0x1e3   : > { %s1600_s28 = scalar_lea.hbm %s2390_s25, 2048  ;;  %s1604_s4 = scalar_lea.hbm %s2441_s3, 4096 }
 0x1e4   : > { %p1601_p7 = scmp.ne.s32.totalorder %s2390_s25, %s1600_s28  ;;  %p1605_p0 = scmp.lt.u32.totalorder %s2390_s25, %s2441_s3 }
 0x1e5   : > { %p1606_p1 = scmp.lt.u32.totalorder %s1604_s4, %s1600_s28  ;;  %p1608_p6 = scmp.lt.u32.totalorder %s1600_s28, %s2390_s25 }
 0x1e6   : > { %p1602_p8 = pnand %p1601_p7, %p2449_p11 }
 0x1e7   : > { %p1607_p3 = por %p1606_p1, %p1605_p0 }
 0x1e8   : > { %p1603_p9 = pneg %p1602_p8 }
 0x1e9   : > { %p1609_p12 = por %p1608_p6, %p1607_p3 }
 0x1eb   : > { %p1610_p13 = pnand %p1609_p12, %p1603_p9 }
 0x1ed   : > { %1613 = shalt.err (!%p1610_p13)
}
 0x1ee   : > { %1437 = dma.vmem_to_hbm [thread:$0]  (%p2449_p11), %s2392_s19, 2048, %s2390_s25, %s1232_s26  }
 0x1ef PF: > { %s1258_s9 = sand.u32 1, %s1640_s12   ;;  %p2450_p5 = scmp.ne.s32.totalorder %s2445_s24, 0 }
 0x1f0   : > { %p2451_p10 = scmp.ge.s32.totalorder %s1652_s15, 2  ;;  %s1259_s10 = scalar_lea.sflag [#allocation4], %s1258_s9 }
 0x1f2   : > { %p1444_p2 = pnand %p2451_p10, %p2450_p5 }
 0x1f4   : > { %1635 = dma.done.wait (!%p1444_p2), %s1259_s10, 2048  }
 0x1f5   : > { %1637 = vsyncadd (!%p1444_p2), %s1259_s10, 4294965248  ;;  %p16_p4 = scmp.ge.s32.totalorder %s1705_s18, 4   ;;  %s2452_s12 = smov %s1644_s13 }
 0x1f6   : > { %s2453_s13 = smov %s1648_s14  ;;  %s2454_s14 = smov %s1717_s21 }
 0x1f7   : > { %s2455_s15 = smov %s1705_s18  ;;  %18 = sbr.rel (!%p16_p4) target bundleno = 5 (0x5), region = 77 }
 0x1fe   :  { %1264 = vsyncpa [#allocation3], 1 }
 0x1ff   :  { %1266 = vsyncpa [#allocation3 + $0x1], 1 }
 0x200   :  { %1267 = vsyncpa [#allocation4], 1 }
 0x201   :  { %1269 = vsyncpa [#allocation4 + $0x1], 1 }

</bundles_post_ra>
